<compile_context>
chip_gen: v7x
topology: tpu7x:2x2x1
jax: 0.10.0
libtpu: 0.0.40
codegen_flags: <defaults>
</compile_context>

<pallas_src>
import functools

import jax
import jax.numpy as jnp
from jax.experimental import pallas as pl
from jax.experimental.pallas import tpu as pltpu


# ----------------------------------------------------------------------------
# Kernel 1 (main): fused 1x1 conv (+folded BN1) + global-avg-pool partial sums.
#   grid = (N, T) over images and row tiles of the flattened (H*W) axis.
# ----------------------------------------------------------------------------
def _conv_bn_pool_kernel(x_ref, w_ref, b_ref, feasc_ref, psum_ref, *,
                         hw, tm, needs_mask):
    t = pl.program_id(1)

    # psum block index is constant along t -> VMEM-resident accumulator.
    @pl.when(t == 0)
    def _init():
        psum_ref[...] = jnp.zeros_like(psum_ref)

    x = x_ref[0]                                                   # (tm, Cin)
    acts = jnp.dot(x, w_ref[...], preferred_element_type=jnp.float32)
    acts = acts + b_ref[...]                                       # (tm, C1)
    feasc_ref[0] = acts                                            # lane-dense store

    # Partial sum for the global average pool (mask padded rows, if any).
    if needs_mask:
        row0 = t * tm
        ridx = row0 + jax.lax.broadcasted_iota(jnp.int32, (tm, 1), 0)
        acts_for_sum = jnp.where(ridx < hw, acts, 0.0)
    else:
        acts_for_sum = acts
    part = jnp.sum(acts_for_sum, axis=0, keepdims=True)            # (1, C1)
    psum_ref[...] += part[None, :, :]


# ----------------------------------------------------------------------------
# Kernel 2 (head): linear(+folded BN_v1) -> relu -> softmax(2) -> blend logits.
#   Everything is tiny; single invocation, all operands resident in VMEM.
# ----------------------------------------------------------------------------
def _head_kernel(pool_ref, wc_ref, bc_ref, lx_ref, ly_ref, logit_ref):
    z = jnp.dot(pool_ref[...], wc_ref[...],
                preferred_element_type=jnp.float32) + bc_ref[...]  # (N, 2)
    z = jnp.maximum(z, 0.0)                                        # relu
    z0 = z[:, 0:1]
    z1 = z[:, 1:2]
    m = jnp.maximum(z0, z1)
    e0 = jnp.exp(z0 - m)
    e1 = jnp.exp(z1 - m)
    inv = 1.0 / (e0 + e1)
    p0 = e0 * inv                                                  # (N, 1)
    p1 = e1 * inv
    logit_ref[...] = p0 * lx_ref[...] + p1 * ly_ref[...]


# ----------------------------------------------------------------------------
# Forward wrapper. Inputs are PyTorch-style: x/y NCHW, logitx/logity (N, L).
# ----------------------------------------------------------------------------
def ahbf_forward(x, y, logitx, logity, params, *, tm=512):
    eps = 1e-5
    xy = jnp.concatenate([x, y], axis=1)                       # (N, Cin, H, W)
    N, Cin, H, W = xy.shape
    C1 = params["w1"].shape[1]

    # NHWC internally (channels on the lane axis).
    x_nhwc = jnp.transpose(xy, (0, 2, 3, 1)).astype(jnp.float32)

    # Fold BatchNorm2d (eval) into the 1x1 conv: y = x @ (w*s1) + (bias*s1 + b1)
    s1 = params["g1"] / jnp.sqrt(params["v1"] + eps)
    b1 = params["b1"] - params["m1"] * s1
    w_fold = (params["w1"] * s1[None, :]).astype(jnp.float32)      # (Cin, C1)
    bias_fold = (params["conv1_b"] * s1 + b1).reshape(1, -1).astype(jnp.float32)

    # Fold BatchNorm1d (eval) into the control linear.
    sc = params["gc"] / jnp.sqrt(params["vc"] + eps)
    bc_bn = params["betac"] - params["mc"] * sc
    wc_fold = (params["wc"] * sc[None, :]).astype(jnp.float32)     # (C1, 2)
    bc_fold = (params["bc"] * sc + bc_bn).reshape(1, -1).astype(jnp.float32)

    HW = H * W
    x_rows = x_nhwc.reshape(N, HW, Cin)

    # Tile the flattened spatial axis; whole image in one tile when it fits.
    tm_eff = HW if HW <= tm else tm                        # tm is a multiple of 8
    T = pl.cdiv(HW, tm_eff)
    HW_pad = T * tm_eff
    if HW_pad != HW:
        x_rows = jnp.pad(x_rows, ((0, 0), (0, HW_pad - HW), (0, 0)))

    kernel = functools.partial(_conv_bn_pool_kernel, hw=HW, tm=tm_eff,
                               needs_mask=(HW_pad != HW))

    feasc_rows, psum = pl.pallas_call(
        kernel,
        out_shape=(
            jax.ShapeDtypeStruct((N, HW_pad, C1), jnp.float32),    # feasc
            jax.ShapeDtypeStruct((N, 1, C1), jnp.float32),         # pooled sums
        ),
        grid_spec=pltpu.PrefetchScalarGridSpec(
            num_scalar_prefetch=0,
            grid=(N, T),
            in_specs=[
                pl.BlockSpec((1, tm_eff, Cin), lambda n, t: (n, t, 0)),
                pl.BlockSpec((Cin, C1), lambda n, t: (0, 0)),
                pl.BlockSpec((1, C1), lambda n, t: (0, 0)),
            ],
            out_specs=(
                pl.BlockSpec((1, tm_eff, C1), lambda n, t: (n, t, 0)),
                pl.BlockSpec((1, 1, C1), lambda n, t: (n, 0, 0)),
            ),
        ),
        compiler_params=pltpu.CompilerParams(
            dimension_semantics=("parallel", "arbitrary")),
    )(x_rows, w_fold, bias_fold)

    pooled = psum[:, 0, :] * (1.0 / HW)                            # (N, C1) avg pool
    feasc = feasc_rows[:, :HW, :].reshape(N, H, W, C1)
    feasc_nchw = jnp.transpose(feasc, (0, 3, 1, 2))                # back to NCHW

    logit = pl.pallas_call(
        _head_kernel,
        out_shape=jax.ShapeDtypeStruct((N, logitx.shape[1]), jnp.float32),
    )(pooled, wc_fold, bc_fold,
      logitx.astype(jnp.float32), logity.astype(jnp.float32))

    # TODO(synk): training-mode BatchNorm (batch statistics) is not implemented;
    # this matches nn.BatchNorm2d/BatchNorm1d in eval() mode.
    return feasc_nchw, logit


# ----------------------------------------------------------------------------
# Plain-JAX reference for a sanity check.
# ----------------------------------------------------------------------------
def reference_forward(x, y, logitx, logity, params):
    eps = 1e-5
    xy = jnp.concatenate([x, y], axis=1)                           # NCHW
    z = jnp.einsum("nchw,cd->ndhw", xy, params["w1"])
    z = z + params["conv1_b"][None, :, None, None]
    s1 = params["g1"] / jnp.sqrt(params["v1"] + eps)
    b1 = params["b1"] - params["m1"] * s1
    feasc = z * s1[None, :, None, None] + b1[None, :, None, None]
    pooled = jnp.mean(feasc, axis=(2, 3))                          # (N, C1)
    zc = pooled @ params["wc"] + params["bc"]
    sc = params["gc"] / jnp.sqrt(params["vc"] + eps)
    bc_bn = params["betac"] - params["mc"] * sc
    zc = jnp.maximum(zc * sc + bc_bn, 0.0)
    feas = jax.nn.softmax(zc, axis=1)
    logit = feas[:, 0:1] * logitx + feas[:, 1:2] * logity
    return feasc, logit


if __name__ == "__main__":
    # AHBF(inchannel=128, aux=1, grow_rate=32)  ->  inchannel2=96, real_in=224
    inchannel1 = 128
    aux = 1
    grow_rate = 32
    inchannel2 = inchannel1 - aux * grow_rate
    real_in = inchannel1 + inchannel2
    N, H, W = 2, 16, 16
    num_classes = 10

    key = jax.random.PRNGKey(0)
    ks = jax.random.split(key, 16)

    x = jax.random.normal(ks[0], (N, inchannel1, H, W), jnp.float32)
    y = jax.random.normal(ks[1], (N, inchannel2, H, W), jnp.float32)
    logitx = jax.random.normal(ks[2], (N, num_classes), jnp.float32)
    logity = jax.random.normal(ks[3], (N, num_classes), jnp.float32)

    params = {
        # conv1: 1x1 (real_in -> inchannel1) with bias; stored as (Cin, C1) matmul
        # weight (i.e. PyTorch (C1, Cin, 1, 1) transposed).
        "w1": 0.05 * jax.random.normal(ks[4], (real_in, inchannel1), jnp.float32),
        "conv1_b": 0.05 * jax.random.normal(ks[5], (inchannel1,), jnp.float32),
        # bn1 over inchannel1 channels (running stats, eval mode)
        "g1": 1.0 + 0.1 * jax.random.normal(ks[6], (inchannel1,), jnp.float32),
        "b1": 0.1 * jax.random.normal(ks[7], (inchannel1,), jnp.float32),
        "m1": 0.1 * jax.random.normal(ks[8], (inchannel1,), jnp.float32),
        "v1": jnp.abs(1.0 + 0.1 * jax.random.normal(ks[9], (inchannel1,), jnp.float32)),
        # control_v1: Linear(inchannel1 -> 2) with bias; stored as (C1, 2)
        "wc": 0.1 * jax.random.normal(ks[10], (inchannel1, 2), jnp.float32),
        "bc": 0.1 * jax.random.normal(ks[11], (2,), jnp.float32),
        # bn_v1 over 2 features (running stats, eval mode)
        "gc": 1.0 + 0.1 * jax.random.normal(ks[12], (2,), jnp.float32),
        "betac": 0.1 * jax.random.normal(ks[13], (2,), jnp.float32),
        "mc": 0.1 * jax.random.normal(ks[14], (2,), jnp.float32),
        "vc": jnp.abs(1.0 + 0.1 * jax.random.normal(ks[15], (2,), jnp.float32)),
    }

    feasc, logit = ahbf_forward(x, y, logitx, logity, params)
    feasc = jax.block_until_ready(feasc)
    logit = jax.block_until_ready(logit)

    feasc_ref, logit_ref = reference_forward(x, y, logitx, logity, params)

    assert feasc.shape == (N, inchannel1, H, W), feasc.shape
    assert logit.shape == (N, num_classes), logit.shape
    assert jnp.allclose(feasc, feasc_ref, rtol=1e-3, atol=1e-3), \
        float(jnp.max(jnp.abs(feasc - feasc_ref)))
    assert jnp.allclose(logit, logit_ref, rtol=1e-3, atol=1e-3), \
        float(jnp.max(jnp.abs(logit - logit_ref)))

    print("KERNEL_OK")
</pallas_src>

<mosaic_0001>
module attributes {stable_mosaic.version = 11 : i64} {
  func.func @_conv_bn_pool_kernel(%arg0: i32, %arg1: i32, %arg2: memref<1x256x224xf32, #tpu.memory_space<vmem>>, %arg3: memref<224x128xf32, #tpu.memory_space<vmem>>, %arg4: memref<1x128xf32, #tpu.memory_space<vmem>>, %arg5: memref<1x256x128xf32, #tpu.memory_space<vmem>>, %arg6: memref<1x1x128xf32, #tpu.memory_space<vmem>>) attributes {dimension_semantics = [#tpu.dimension_semantics<parallel>, #tpu.dimension_semantics<arbitrary>], iteration_bounds = array<i64: 2, 1>, scalar_prefetch = 0 : i64, scratch_operands = 0 : i64, tpu.core_type = #tpu.core_type<tc>, window_params = [{transform_indices = @transform_0, window_bounds = array<i64: 1, 256, 224>}, {pipeline_mode = #tpu.pipeline_mode<synchronous>, transform_indices = @transform_1, window_bounds = array<i64: 224, 128>}, {pipeline_mode = #tpu.pipeline_mode<synchronous>, transform_indices = @transform_2, window_bounds = array<i64: 1, 128>}, {transform_indices = @transform_3, window_bounds = array<i64: 1, 256, 128>}, {transform_indices = @transform_4, window_bounds = array<i64: 1, 1, 128>}]} {
    %c0_i32 = arith.constant 0 : i32
    %0 = arith.cmpi eq, %arg1, %c0_i32 : i32
    %1 = arith.extui %0 : i1 to i32
    %c0_i32_0 = arith.constant 0 : i32
    %2 = arith.cmpi ne, %1, %c0_i32_0 : i32
    scf.if %2 {
      %cst_17 = arith.constant 0.000000e+00 : f32
      %19 = vector.broadcast %cst_17 : f32 to vector<1x1x128xf32>
      %c0_18 = arith.constant 0 : index
      %c0_19 = arith.constant 0 : index
      %c0_20 = arith.constant 0 : index
      %20 = vector.load %arg6[%c0_18, %c0_19, %c0_20] : memref<1x1x128xf32, #tpu.memory_space<vmem>>, vector<1x1x128xf32>
      tpu.vector_store %arg6[%c0_18, %c0_19, %c0_20], %19 {strides = array<i32>} : memref<1x1x128xf32, #tpu.memory_space<vmem>>, vector<1x1x128xf32>,
    } else {
    }
    %c0 = arith.constant 0 : index
    %c0_1 = arith.constant 0 : index
    %c0_2 = arith.constant 0 : index
    %3 = vector.load %arg2[%c0, %c0_1, %c0_2] : memref<1x256x224xf32, #tpu.memory_space<vmem>>, vector<1x256x224xf32>
    %4 = vector.shape_cast %3 : vector<1x256x224xf32> to vector<256x224xf32>
    %c0_3 = arith.constant 0 : index
    %c0_4 = arith.constant 0 : index
    %5 = vector.load %arg3[%c0_3, %c0_4] : memref<224x128xf32, #tpu.memory_space<vmem>>, vector<224x128xf32>
    %cst = arith.constant dense<0.000000e+00> : vector<256x128xf32>
    %6 = tpu.matmul %4, %5, %cst {dimension_numbers = #tpu.dot_dimension_numbers<[1], [0], [0], [1], [0, 0, 1, 1], [], []>} : vector<256x224xf32>, vector<224x128xf32>, vector<256x128xf32> -> vector<256x128xf32>
    %c0_5 = arith.constant 0 : index
    %c0_6 = arith.constant 0 : index
    %7 = vector.load %arg4[%c0_5, %c0_6] : memref<1x128xf32, #tpu.memory_space<vmem>>, vector<1x128xf32>
    %8 = vector.broadcast %7 : vector<1x128xf32> to vector<256x128xf32>
    %9 = arith.addf %6, %8 : vector<256x128xf32>
    %c0_7 = arith.constant 0 : index
    %c0_8 = arith.constant 0 : index
    %c0_9 = arith.constant 0 : index
    %10 = vector.load %arg5[%c0_7, %c0_8, %c0_9] : memref<1x256x128xf32, #tpu.memory_space<vmem>>, vector<1x256x128xf32>
    %11 = vector.shape_cast %10 : vector<1x256x128xf32> to vector<256x128xf32>
    %12 = vector.shape_cast %9 : vector<256x128xf32> to vector<1x256x128xf32>
    tpu.vector_store %arg5[%c0_7, %c0_8, %c0_9], %12 {strides = array<i32>} : memref<1x256x128xf32, #tpu.memory_space<vmem>>, vector<1x256x128xf32>,
    %cst_10 = arith.constant dense<0.000000e+00> : vector<128xf32>
    %13 = vector.multi_reduction <add>, %9, %cst_10 [0] : vector<256x128xf32> to vector<128xf32>
    %14 = vector.shape_cast %13 : vector<128xf32> to vector<1x128xf32>
    %c0_11 = arith.constant 0 : index
    %c0_12 = arith.constant 0 : index
    %c0_13 = arith.constant 0 : index
    %15 = vector.load %arg6[%c0_11, %c0_12, %c0_13] : memref<1x1x128xf32, #tpu.memory_space<vmem>>, vector<1x1x128xf32>
    %16 = vector.shape_cast %14 : vector<1x128xf32> to vector<1x1x128xf32>
    %17 = arith.addf %15, %16 : vector<1x1x128xf32>
    %c0_14 = arith.constant 0 : index
    %c0_15 = arith.constant 0 : index
    %c0_16 = arith.constant 0 : index
    %18 = vector.load %arg6[%c0_14, %c0_15, %c0_16] : memref<1x1x128xf32, #tpu.memory_space<vmem>>, vector<1x1x128xf32>
    tpu.vector_store %arg6[%c0_14, %c0_15, %c0_16], %17 {strides = array<i32>} : memref<1x1x128xf32, #tpu.memory_space<vmem>>, vector<1x1x128xf32>,
    return
  }
  func.func @transform_0(%arg0: i32, %arg1: i32) -> (i32, i32, i32) {
    %c0_i32 = arith.constant 0 : i32
    %c0_i32_0 = arith.constant 0 : i32
    return %arg0, %arg1, %c0_i32 : i32, i32, i32
  }
  func.func @transform_1(%arg0: i32, %arg1: i32) -> (i32, i32) {
    %c0_i32 = arith.constant 0 : i32
    %c0_i32_0 = arith.constant 0 : i32
    %c0_i32_1 = arith.constant 0 : i32
    return %c0_i32, %c0_i32_0 : i32, i32
  }
  func.func @transform_2(%arg0: i32, %arg1: i32) -> (i32, i32) {
    %c0_i32 = arith.constant 0 : i32
    %c0_i32_0 = arith.constant 0 : i32
    %c0_i32_1 = arith.constant 0 : i32
    return %c0_i32, %c0_i32_0 : i32, i32
  }
  func.func @transform_3(%arg0: i32, %arg1: i32) -> (i32, i32, i32) {
    %c0_i32 = arith.constant 0 : i32
    %c0_i32_0 = arith.constant 0 : i32
    return %arg0, %arg1, %c0_i32 : i32, i32, i32
  }
  func.func @transform_4(%arg0: i32, %arg1: i32) -> (i32, i32, i32) {
    %c0_i32 = arith.constant 0 : i32
    %c0_i32_0 = arith.constant 0 : i32
    %c0_i32_1 = arith.constant 0 : i32
    return %arg0, %c0_i32, %c0_i32_0 : i32, i32, i32
  }
}

</mosaic_0001>

<bundles_post_ra>
// kernel: tpu_custom_call.1
= control target key start
LH: loop header
LB: loop body
LE: loop exit
PB: predicated region body
PF: predicated region fallthrough
CT: control target
= control target key end

     0   :  { %10 = vsyncpa [#allocation3], 0  ;;  %s1700_s0 = inlined_call_operand.vmem [shape: f32[2,256,224], index: 0, kind: input, shape index: {}]   ;;  %s1701_s1 = inlined_call_operand.vmem [shape: f32[224,128], index: 1, kind: input, shape index: {}]   ;;  %s1702_s2 = inlined_call_operand.vmem [shape: f32[1,128], index: 2, kind: input, shape index: {}]   ;;  %s1703_s3 = inlined_call_operand.hbm [shape: f32[2,256,128], index: 3, kind: output, shape index: {0}]   ;;  %s1704_s4 = inlined_call_operand.hbm [shape: f32[2,1,128], index: 4, kind: output, shape index: {1}]  }
   0x1   :  { %12 = vsyncpa [#allocation3 + $0x1], 0 }
   0x2   :  { %13 = vsyncpa [#allocation5], 0 }
   0x3   :  { %15 = vsyncpa [#allocation5 + $0x1], 0  ;;  %s1207_s15 = smov 0   ;;  %s1209_s16 = smov 0  }
   0x4   :  { %s1211_s17 = smov 0   ;;  %s1213_s18 = smov 0  }
   0x5   :  { %s1215_s19 = smov 0   ;;  %s1217_s20 = smov 0  }
   0x6 LB: > { %s881_s21 = sadd.s32 4294967295, %s1174_s20   ;;  %s882_s22 = sadd.s32 4294967294, %s1174_s20   ;;  %s1174_s20 = sphi %s1217_s20, %s21_s20   ;;  %s1170_s19 = sphi %s1215_s19, %s1711_s19   ;;  %s1166_s18 = sphi %s1213_s18, %s1710_s18   ;;  %s1162_s17 = sphi %s1211_s17, %s1709_s17   ;;  %s1158_s16 = sphi %s1209_s16, %s1708_s16   ;;  %s1154_s15 = sphi %s1207_s15, %s1707_s15  }
   0x7   : > { %s33_s23 = sadd.s32 1, %s1170_s19  ;;  %s112_s24 = sadd.s32 1, %s1162_s17 }
   0x8   : > { %p35_p0 = scmp.ge.s32.totalorder %s33_s23, 2  ;;  %p122_p1 = scmp.ne.s32.totalorder %s1162_s17, %s1158_s16 }
   0x9   : > { %p123_p2 = scmp.eq.s32.totalorder %s881_s21, 1  ;;  %p128_p3 = scmp.ne.s32.totalorder %s1158_s16, %s1154_s15 }
   0xa   : > { %s1713_s23 = smov (%p35_p0, %s33_s23), 0  ;;  %p129_p5 = scmp.eq.s32.totalorder %s882_s22, 1 }
   0xb   : > { %p1247_p4 = por %p123_p2, %p122_p1  ;;  %s107_s26 = ssub.s32 %s1170_s19, %s1713_s23 }
   0xc   : > { %p885_p6 = scmp.ge.s32.totalorder %s1174_s20, 1  ;;  %p110_p7 = scmp.eq.s32.totalorder %s107_s26, 0 }
   0xd   : > { %p1254_p8 = por %p129_p5, %p128_p3  ;;  %p193_p9 = scmp.lt.s32.totalorder %s1174_s20, 3 }
   0xe   : > { %s1260_s28 = scalar_select %p110_p7, %s1162_s17, %s112_s24  }
   0xf   : > { %p194_p10 = pnand %p885_p6, %p193_p9 }
  0x10   : > { %v309_v0 = vld [vmem:[%s1701_s1] sm:$0xff] (!%p194_p10)  ;;  %v310_v1 = vld [vmem:[%s1701_s1 + $0x8] sm:$0xff] (!%p194_p10)  ;;  %v311_v2 = vld [vmem:[%s1701_s1 + $0x10] sm:$0xff] (!%p194_p10)  ;;  %p229_p11 = scmp.lt.s32.totalorder (!%p194_p10), %s1166_s18, 1  ;;  %v1176_v3 = vmov (!%p194_p10), 0.0|0.0   ;;  %vm344_vm0 = vcmask (!%p194_p10), 785408  }
  0x11   : > { %197 = sbr.rel (%p194_p10) target bundleno = 421 (0x1a5), region = 32  ;;  %930 = vmatprep.subr.bf16.mxu0 (!%p194_p10), %v1176_v3  ;;  %v931_v4 = vpack.c.bf16 (!%p194_p10), %v310_v1, %v309_v0  ;;  %v312_v5 = vld [vmem:[%s1701_s1 + $0x18] sm:$0xff] (!%p194_p10)  ;;  %972 = vmatprep.subr.bf16.mxu1 (!%p194_p10), %v1176_v3  ;;  %v313_v7 = vld [vmem:[%s1701_s1 + $0x20] sm:$0xff] (!%p194_p10)  ;;  %v314_v8 = vld [vmem:[%s1701_s1 + $0x28] sm:$0xff] (!%p194_p10)  ;;  %s1478_s26 = sand.u32 (!%p194_p10), 1, %s1158_s16  }
  0x12   : > { %v934_v6 = vpack.c.bf16 (!%p194_p10), %v312_v5, %v311_v2  ;;  %v937_v9 = vpack.c.bf16 (!%p194_p10), %v314_v8, %v313_v7  ;;  %v315_v10 = vld [vmem:[%s1701_s1 + $0x30] sm:$0xff] (!%p194_p10)  ;;  %v316_v11 = vld [vmem:[%s1701_s1 + $0x38] sm:$0xff] (!%p194_p10)  ;;  %v317_v14 = vld [vmem:[%s1701_s1 + $0x40] sm:$0xff] (!%p194_p10)  ;;  %s1481_s30 = scalar_lea.vmem (!%p194_p10), [#allocation4], %s1478_s26  ;;  %s886_s5 = sshll.u32 (!%p194_p10), %s1478_s26, 8 }
  0x13   : > { %932 = vmatpush1.bf16.msra.mxu0 (!%p194_p10), %v931_v4  ;;  %986 = vmatpush1.bf16.msra.mxu1 (!%p194_p10), %v931_v4  ;;  %v940_v13 = vpack.c.bf16 (!%p194_p10), %v316_v11, %v315_v10  ;;  %v318_v15 = vld [vmem:[%s1701_s1 + $0x48] sm:$0xff] (!%p194_p10)  ;;  %v319_v18 = vld [vmem:[%s1701_s1 + $0x50] sm:$0xff] (!%p194_p10)  ;;  %v320_v19 = vld [vmem:[%s1701_s1 + $0x58] sm:$0xff] (!%p194_p10)  ;;  %s929_s8 = sshll.u32 (!%p194_p10), %s1166_s18, 12  ;;  %s739_s13 = scalar_lea.sflag (!%p194_p10), [#allocation3], %s1478_s26 }
  0x14   : > { %933 = vmatprep.subr.bf16.mxu0 (!%p194_p10), %v1176_v3  ;;  %973 = vmatprep.subr.bf16.mxu1 (!%p194_p10), %v1176_v3  ;;  %v943_v17 = vpack.c.bf16 (!%p194_p10), %v318_v15, %v317_v14  ;;  %v946_v20 = vpack.c.bf16 (!%p194_p10), %v320_v19, %v319_v18  ;;  %v321_v21 = vld [vmem:[%s1701_s1 + $0x60] sm:$0xff] (!%p194_p10)  ;;  %v322_v22 = vld [vmem:[%s1701_s1 + $0x68] sm:$0xff] (!%p194_p10)  ;;  %v323_v24 = vld [vmem:[%s1701_s1 + $0x70] sm:$0xff] (!%p194_p10)  ;;  %s1599_s12 = scalar_lea.hbm (!%p194_p10), %s1703_s3, %s929_s8  ;;  %s1178_s21 = smov (!%p194_p10), [#allocation2]  }
  0x15   : > { %v949_v23 = vpack.c.bf16 (!%p194_p10), %v322_v22, %v321_v21  ;;  %v324_v25 = vld [vmem:[%s1701_s1 + $0x78] sm:$0xff] (!%p194_p10)  ;;  %v325_v27 = vld [vmem:[%s1701_s1 + $0x80] sm:$0xff] (!%p194_p10)  ;;  %v326_v28 = vld [vmem:[%s1701_s1 + $0x88] sm:$0xff] (!%p194_p10) }
  0x16   : > { %v952_v26 = vpack.c.bf16 (!%p194_p10), %v324_v25, %v323_v24  ;;  %v955_v29 = vpack.c.bf16 (!%p194_p10), %v326_v28, %v325_v27  ;;  %v327_v30 = vld [vmem:[%s1701_s1 + $0x90] sm:$0xff] (!%p194_p10)  ;;  %v328_v31 = vld [vmem:[%s1701_s1 + $0x98] sm:$0xff] (!%p194_p10)  ;;  %v329_v33 = vld [vmem:[%s1701_s1 + $0xa0] sm:$0xff] (!%p194_p10) }
  0x17   : > { %935 = vmatpush1.bf16.msra.mxu0 (!%p194_p10), %v934_v6  ;;  %987 = vmatpush1.bf16.msra.mxu1 (!%p194_p10), %v934_v6  ;;  %v958_v32 = vpack.c.bf16 (!%p194_p10), %v328_v31, %v327_v30  ;;  %v330_v34 = vld [vmem:[%s1701_s1 + $0xa8] sm:$0xff] (!%p194_p10)  ;;  %v331_v36 = vld [vmem:[%s1701_s1 + $0xb0] sm:$0xff] (!%p194_p10)  ;;  %v332_v37 = vld [vmem:[%s1701_s1 + $0xb8] sm:$0xff] (!%p194_p10) }
  0x18   : > { %s230_s11 = scalar_select %p229_p11, %s1166_s18, 1  ;;  %936 = vmatprep.subr.bf16.mxu0 %v1176_v3  ;;  %974 = vmatprep.subr.bf16.mxu1 %v1176_v3  ;;  %v961_v35 = vpack.c.bf16 %v330_v34, %v329_v33  ;;  %v964_v38 = vpack.c.bf16 %v332_v37, %v331_v36  ;;  %v333_v39 = vld [vmem:[%s1701_s1 + $0xc0] sm:$0xff]  ;;  %v334_v40 = vld [vmem:[%s1701_s1 + $0xc8] sm:$0xff]  ;;  %v335_v42 = vld [vmem:[%s1701_s1 + $0xd0] sm:$0xff] }
  0x19   : > { %v967_v41 = vpack.c.bf16 %v334_v40, %v333_v39  ;;  %v336_v43 = vld [vmem:[%s1701_s1 + $0xd8] sm:$0xff] }
  0x1a   : > { %s928_s22 = sshll.u32 %s230_s11, 9  ;;  %v970_v44 = vpack.c.bf16 %v336_v43, %v335_v42  ;;  %v1177_v43 = vmov 0.0  }
  0x1b   : > { %s1289_s29 = scalar_lea.vmem %s1700_s0, %s928_s22  ;;  %938 = vmatpush1.bf16.msra.mxu0 %v937_v9  ;;  %988 = vmatpush1.bf16.msra.mxu1 %v937_v9  ;;  %244 = vst [vmem:[%s1481_s30] sm:$0x1] %v1177_v43  ;;  %s1068_s22 = sshll.u32 %s1178_s21, 4  ;;  %s1069_s22 = int_to_ptr.vmem [resolvable:$false] %s1068_s22 }
  0x1c   : > { %v246_v12 = vld [vmem:[%s1289_s29 + $0x8] sm:$0xff]  ;;  %939 = vmatprep.subr.bf16.mxu0 %v1176_v3  ;;  %975 = vmatprep.subr.bf16.mxu1 %v1176_v3  ;;  %v245_v45 = vld [vmem:[%s1289_s29] sm:$0xff]  ;;  %v248_v47 = vld [vmem:[%s1289_s29 + $0x18] sm:$0xff]  ;;  %s1070_s24 = scalar_lea.vmem %s1069_s22, 8192 }
  0x1d   : > { %890 = vmatprep.mubr.msk.f32.mxu0 %vm344_vm0, %v246_v12  ;;  %v278_v16 = vld [vmem:[%s1289_s29 + $0x108] sm:$0xff]  ;;  %v277_v46 = vld [vmem:[%s1289_s29 + $0x100] sm:$0xff]  ;;  %v280_v48 = vld [vmem:[%s1289_s29 + $0x118] sm:$0xff] }
  0x1e   : > { %906 = vmatprep.mubr.msk.f32.mxu1 %vm344_vm0, %v278_v16  ;;  %v247_v49 = vld [vmem:[%s1289_s29 + $0x10] sm:$0xff]  ;;  %v250_v51 = vld [vmem:[%s1289_s29 + $0x28] sm:$0xff]  ;;  %v249_v53 = vld [vmem:[%s1289_s29 + $0x20] sm:$0xff] }
  0x1f   : > { %941 = vmatpush1.bf16.msra.mxu0 %v940_v13  ;;  %989 = vmatpush1.bf16.msra.mxu1 %v940_v13  ;;  %v279_v50 = vld [vmem:[%s1289_s29 + $0x110] sm:$0xff]  ;;  %v282_v52 = vld [vmem:[%s1289_s29 + $0x128] sm:$0xff]  ;;  %v281_v54 = vld [vmem:[%s1289_s29 + $0x120] sm:$0xff] }
  0x20   : > { %942 = vmatprep.subr.bf16.mxu0 %v1176_v3  ;;  %976 = vmatprep.subr.bf16.mxu1 %v1176_v3  ;;  %v252_v55 = vld [vmem:[%s1289_s29 + $0x38] sm:$0xff]  ;;  %v251_v57 = vld [vmem:[%s1289_s29 + $0x30] sm:$0xff]  ;;  %v254_v59 = vld [vmem:[%s1289_s29 + $0x48] sm:$0xff] }
  0x21   : > { %v284_v56 = vld [vmem:[%s1289_s29 + $0x138] sm:$0xff]  ;;  %v283_v58 = vld [vmem:[%s1289_s29 + $0x130] sm:$0xff]  ;;  %v286_v60 = vld [vmem:[%s1289_s29 + $0x148] sm:$0xff] }
  0x22   : > { %v253_v61 = vld [vmem:[%s1289_s29 + $0x40] sm:$0xff]  ;;  %v256_v63 = vld [vmem:[%s1289_s29 + $0x58] sm:$0xff]  ;;  %v255_v1 = vld [vmem:[%s1289_s29 + $0x50] sm:$0xff] }
  0x23   : > { %944 = vmatpush1.bf16.msra.mxu0 %v943_v17  ;;  %990 = vmatpush1.bf16.msra.mxu1 %v943_v17  ;;  %v285_v62 = vld [vmem:[%s1289_s29 + $0x140] sm:$0xff]  ;;  %v288_v0 = vld [vmem:[%s1289_s29 + $0x158] sm:$0xff]  ;;  %v287_v2 = vld [vmem:[%s1289_s29 + $0x150] sm:$0xff] }
  0x24   : > { %945 = vmatprep.subr.bf16.mxu0 %v1176_v3  ;;  %977 = vmatprep.subr.bf16.mxu1 %v1176_v3  ;;  %v290_v4 = vld [vmem:[%s1289_s29 + $0x168] sm:$0xff]  ;;  %v257_v5 = vld [vmem:[%s1289_s29 + $0x60] sm:$0xff]  ;;  %v260_v7 = vld [vmem:[%s1289_s29 + $0x78] sm:$0xff] }
  0x25   : > { %v289_v6 = vld [vmem:[%s1289_s29 + $0x160] sm:$0xff]  ;;  %v292_v8 = vld [vmem:[%s1289_s29 + $0x178] sm:$0xff]  ;;  %v259_v9 = vld [vmem:[%s1289_s29 + $0x70] sm:$0xff] }
  0x26   : > { %v291_v10 = vld [vmem:[%s1289_s29 + $0x170] sm:$0xff]  ;;  %v262_v11 = vld [vmem:[%s1289_s29 + $0x88] sm:$0xff]  ;;  %v261_v13 = vld [vmem:[%s1289_s29 + $0x80] sm:$0xff] }
  0x27   : > { %947 = vmatpush1.bf16.msra.mxu0 %v946_v20  ;;  %991 = vmatpush1.bf16.msra.mxu1 %v946_v20  ;;  %v294_v12 = vld [vmem:[%s1289_s29 + $0x188] sm:$0xff]  ;;  %v293_v14 = vld [vmem:[%s1289_s29 + $0x180] sm:$0xff]  ;;  %v264_v15 = vld [vmem:[%s1289_s29 + $0x98] sm:$0xff] }
  0x28   : > { %948 = vmatprep.subr.bf16.mxu0 %v1176_v3  ;;  %978 = vmatprep.subr.bf16.mxu1 %v1176_v3  ;;  %v296_v16 = vld [vmem:[%s1289_s29 + $0x198] sm:$0xff]  ;;  %v263_v17 = vld [vmem:[%s1289_s29 + $0x90] sm:$0xff]  ;;  %v266_v19 = vld [vmem:[%s1289_s29 + $0xa8] sm:$0xff] }
  0x29   : > { %v295_v18 = vld [vmem:[%s1289_s29 + $0x190] sm:$0xff]  ;;  %v298_v20 = vld [vmem:[%s1289_s29 + $0x1a8] sm:$0xff]  ;;  %v265_v21 = vld [vmem:[%s1289_s29 + $0xa0] sm:$0xff] }
  0x2a   : > { %v297_v22 = vld [vmem:[%s1289_s29 + $0x1a0] sm:$0xff]  ;;  %v300_v24 = vld [vmem:[%s1289_s29 + $0x1b8] sm:$0xff]  ;;  %v267_v25 = vld [vmem:[%s1289_s29 + $0xb0] sm:$0xff] }
  0x2b   : > { %950 = vmatpush1.bf16.msra.mxu0 %v949_v23  ;;  %992 = vmatpush1.bf16.msra.mxu1 %v949_v23  ;;  %v268_v23 = vld [vmem:[%s1289_s29 + $0xb8] sm:$0xff]  ;;  %v270_v27 = vld [vmem:[%s1289_s29 + $0xc8] sm:$0xff]  ;;  %v301_v30 = vld [vmem:[%s1289_s29 + $0x1c0] sm:$0xff] }
  0x2c   : > { %951 = vmatprep.subr.bf16.mxu0 %v1176_v3  ;;  %979 = vmatprep.subr.bf16.mxu1 %v1176_v3  ;;  %v302_v28 = vld [vmem:[%s1289_s29 + $0x1c8] sm:$0xff]  ;;  %v272_v31 = vld [vmem:[%s1289_s29 + $0xd8] sm:$0xff]  ;;  %v271_v33 = vld [vmem:[%s1289_s29 + $0xd0] sm:$0xff] }
  0x2d   : > { %v303_v34 = vld [vmem:[%s1289_s29 + $0x1d0] sm:$0xff]  ;;  %v306_v36 = vld [vmem:[%s1289_s29 + $0x1e8] sm:$0xff]  ;;  %v273_v37 = vld [vmem:[%s1289_s29 + $0xe0] sm:$0xff] }
  0x2e   : > { %v276_v39 = vld [vmem:[%s1289_s29 + $0xf8] sm:$0xff]  ;;  %v307_v42 = vld [vmem:[%s1289_s29 + $0x1f0] sm:$0xff] }
  0x2f   : > { %953 = vmatpush1.bf16.msra.mxu0 %v952_v26  ;;  %993 = vmatpush1.bf16.msra.mxu1 %v952_v26  ;;  %v299_v26 = vld [vmem:[%s1289_s29 + $0x1b0] sm:$0xff]  ;;  %v308_v40 = vld [vmem:[%s1289_s29 + $0x1f8] sm:$0xff] }
  0x30   : > { %954 = vmatprep.subr.bf16.mxu0 %v1176_v3  ;;  %980 = vmatprep.subr.bf16.mxu1 %v1176_v3 }
  0x33   : > { %956 = vmatpush1.bf16.msra.mxu0 %v955_v29  ;;  %994 = vmatpush1.bf16.msra.mxu1 %v955_v29  ;;  %v269_v29 = vld [vmem:[%s1289_s29 + $0xc0] sm:$0xff] }
  0x34   : > { %957 = vmatprep.subr.bf16.mxu0 %v1176_v3  ;;  %981 = vmatprep.subr.bf16.mxu1 %v1176_v3 }
  0x37   : > { %959 = vmatpush1.bf16.msra.mxu0 %v958_v32  ;;  %995 = vmatpush1.bf16.msra.mxu1 %v958_v32  ;;  %v304_v32 = vld [vmem:[%s1289_s29 + $0x1d8] sm:$0xff] }
  0x38   : > { %960 = vmatprep.subr.bf16.mxu0 %v1176_v3  ;;  %982 = vmatprep.subr.bf16.mxu1 %v1176_v3 }
  0x3b   : > { %962 = vmatpush1.bf16.msra.mxu0 %v961_v35  ;;  %996 = vmatpush1.bf16.msra.mxu1 %v961_v35  ;;  %v274_v35 = vld [vmem:[%s1289_s29 + $0xe8] sm:$0xff] }
  0x3c   : > { %963 = vmatprep.subr.bf16.mxu0 %v1176_v3  ;;  %983 = vmatprep.subr.bf16.mxu1 %v1176_v3 }
  0x3f   : > { %965 = vmatpush1.bf16.msra.mxu0 %v964_v38  ;;  %997 = vmatpush1.bf16.msra.mxu1 %v964_v38  ;;  %v305_v38 = vld [vmem:[%s1289_s29 + $0x1e0] sm:$0xff] }
  0x40   : > { %966 = vmatprep.subr.bf16.mxu0 %v1176_v3  ;;  %984 = vmatprep.subr.bf16.mxu1 %v1176_v3 }
  0x43   : > { %968 = vmatpush1.bf16.msra.mxu0 %v967_v41  ;;  %998 = vmatpush1.bf16.msra.mxu1 %v967_v41  ;;  %v275_v41 = vld [vmem:[%s1289_s29 + $0xf0] sm:$0xff] }
  0x44   : > { %969 = vmatprep.subr.bf16.mxu0 %v1176_v3  ;;  %985 = vmatprep.subr.bf16.mxu1 %v1176_v3  ;;  %v258_v3 = vld [vmem:[%s1289_s29 + $0x68] sm:$0xff]  ;;  %s1494_s29 = scalar_lea.vmem [#allocation2], %s886_s5 }
  0x45   : > { %s758_s9 = sshll.u32 %s1494_s29, 4  ;;  %s1601_s9 = int_to_ptr.vmem [resolvable:$true] %s758_s9 }
  0x46   : > { %s1064_s14 = scalar_lea.vmem %s1601_s9, 4096  ;;  %p1071_p1 = scmp.lt.s32.totalorder %s1601_s9, %s1069_s22 }
  0x47   : > { %971 = vmatpush1.bf16.msra.mxu0 %v970_v44  ;;  %999 = vmatpush1.bf16.msra.mxu1 %v970_v44  ;;  %v1488_v44 = vld [vmem:[%s1702_s2] ss:$0 sm:$0xff]  ;;  %p1065_p12 = scmp.ne.s32.totalorder %s1601_s9, %s1064_s14  ;;  %p1072_p2 = scmp.lt.s32.totalorder %s1070_s24, %s1064_s14 }
  0x49   : > { %p1066_p13 = pnand %p1065_p12, %p1247_p4  ;;  %p1073_p3 = por %p1072_p2, %p1071_p1 }
  0x4a   : > { %506 = vmatmul.mubr.f32.vlgmr.msra.gmra.mrb[0].mxu0 %v245_v45  ;;  %586 = vmatmul.mubr.f32.vlgmr.msra.gmra.mrb[0].mxu1 %v277_v46 }
  0x4b   : > { %891 = vmatprep.mubr.msk.f32.mxu0 %vm344_vm0, %v248_v47  ;;  %907 = vmatprep.mubr.msk.f32.mxu1 %vm344_vm0, %v280_v48  ;;  %p1067_p0 = pneg %p1066_p13 }
  0x4d   : > { %p1074_p5 = pnand %p1073_p3, %p1067_p0 }
  0x4e   : > { %511 = vmatmul.mubr.f32.gmra.mrb[2].mxu0 %v247_v49  ;;  %591 = vmatmul.mubr.f32.gmra.mrb[2].mxu1 %v279_v50 }
  0x4f   : > { %892 = vmatprep.mubr.msk.f32.mxu0 %vm344_vm0, %v250_v51  ;;  %908 = vmatprep.mubr.msk.f32.mxu1 %vm344_vm0, %v282_v52 }
  0x52   : > { %516 = vmatmul.mubr.f32.gmra.mrb[4].mxu0 %v249_v53  ;;  %596 = vmatmul.mubr.f32.gmra.mrb[4].mxu1 %v281_v54 }
  0x53   : > { %893 = vmatprep.mubr.msk.f32.mxu0 %vm344_vm0, %v252_v55  ;;  %909 = vmatprep.mubr.msk.f32.mxu1 %vm344_vm0, %v284_v56 }
  0x56   : > { %521 = vmatmul.mubr.f32.gmra.mrb[6].mxu0 %v251_v57  ;;  %601 = vmatmul.mubr.f32.gmra.mrb[6].mxu1 %v283_v58 }
  0x57   : > { %894 = vmatprep.mubr.msk.f32.mxu0 %vm344_vm0, %v254_v59  ;;  %910 = vmatprep.mubr.msk.f32.mxu1 %vm344_vm0, %v286_v60 }
  0x5a   : > { %526 = vmatmul.mubr.f32.gmra.mrb[8].mxu0 %v253_v61  ;;  %606 = vmatmul.mubr.f32.gmra.mrb[8].mxu1 %v285_v62 }
  0x5b   : > { %895 = vmatprep.mubr.msk.f32.mxu0 %vm344_vm0, %v256_v63  ;;  %911 = vmatprep.mubr.msk.f32.mxu1 %vm344_vm0, %v288_v0 }
  0x5e   : > { %531 = vmatmul.mubr.f32.gmra.mrb[10].mxu0 %v255_v1  ;;  %611 = vmatmul.mubr.f32.gmra.mrb[10].mxu1 %v287_v2 }
  0x5f   : > { %896 = vmatprep.mubr.msk.f32.mxu0 %vm344_vm0, %v258_v3  ;;  %912 = vmatprep.mubr.msk.f32.mxu1 %vm344_vm0, %v290_v4 }
  0x62   : > { %536 = vmatmul.mubr.f32.gmra.mrb[12].mxu0 %v257_v5  ;;  %616 = vmatmul.mubr.f32.gmra.mrb[12].mxu1 %v289_v6 }
  0x63   : > { %897 = vmatprep.mubr.msk.f32.mxu0 %vm344_vm0, %v260_v7  ;;  %913 = vmatprep.mubr.msk.f32.mxu1 %vm344_vm0, %v292_v8 }
  0x66   : > { %541 = vmatmul.mubr.f32.gmra.mrb[14].mxu0 %v259_v9  ;;  %621 = vmatmul.mubr.f32.gmra.mrb[14].mxu1 %v291_v10 }
  0x67   : > { %898 = vmatprep.mubr.msk.f32.mxu0 %vm344_vm0, %v262_v11  ;;  %914 = vmatprep.mubr.msk.f32.mxu1 %vm344_vm0, %v294_v12 }
  0x6a   : > { %546 = vmatmul.mubr.f32.gmra.mrb[16].mxu0 %v261_v13  ;;  %626 = vmatmul.mubr.f32.gmra.mrb[16].mxu1 %v293_v14 }
  0x6b   : > { %899 = vmatprep.mubr.msk.f32.mxu0 %vm344_vm0, %v264_v15  ;;  %915 = vmatprep.mubr.msk.f32.mxu1 %vm344_vm0, %v296_v16 }
  0x6e   : > { %551 = vmatmul.mubr.f32.gmra.mrb[18].mxu0 %v263_v17  ;;  %631 = vmatmul.mubr.f32.gmra.mrb[18].mxu1 %v295_v18 }
  0x6f   : > { %900 = vmatprep.mubr.msk.f32.mxu0 %vm344_vm0, %v266_v19  ;;  %916 = vmatprep.mubr.msk.f32.mxu1 %vm344_vm0, %v298_v20 }
  0x72   : > { %556 = vmatmul.mubr.f32.gmra.mrb[20].mxu0 %v265_v21  ;;  %636 = vmatmul.mubr.f32.gmra.mrb[20].mxu1 %v297_v22 }
  0x73   : > { %901 = vmatprep.mubr.msk.f32.mxu0 %vm344_vm0, %v268_v23  ;;  %917 = vmatprep.mubr.msk.f32.mxu1 %vm344_vm0, %v300_v24 }
  0x76   : > { %561 = vmatmul.mubr.f32.gmra.mrb[22].mxu0 %v267_v25  ;;  %641 = vmatmul.mubr.f32.gmra.mrb[22].mxu1 %v299_v26 }
  0x77   : > { %902 = vmatprep.mubr.msk.f32.mxu0 %vm344_vm0, %v270_v27  ;;  %918 = vmatprep.mubr.msk.f32.mxu1 %vm344_vm0, %v302_v28 }
  0x7a   : > { %566 = vmatmul.mubr.f32.gmra.mrb[24].mxu0 %v269_v29  ;;  %646 = vmatmul.mubr.f32.gmra.mrb[24].mxu1 %v301_v30 }
  0x7b   : > { %903 = vmatprep.mubr.msk.f32.mxu0 %vm344_vm0, %v272_v31  ;;  %919 = vmatprep.mubr.msk.f32.mxu1 %vm344_vm0, %v304_v32 }
  0x7e   : > { %571 = vmatmul.mubr.f32.gmra.mrb[26].mxu0 %v271_v33  ;;  %651 = vmatmul.mubr.f32.gmra.mrb[26].mxu1 %v303_v34 }
  0x7f   : > { %904 = vmatprep.mubr.msk.f32.mxu0 %vm344_vm0, %v274_v35  ;;  %920 = vmatprep.mubr.msk.f32.mxu1 %vm344_vm0, %v306_v36 }
  0x82   : > { %576 = vmatmul.mubr.f32.gmra.mrb[28].mxu0 %v273_v37  ;;  %656 = vmatmul.mubr.f32.gmra.mrb[28].mxu1 %v305_v38 }
  0x83   : > { %905 = vmatprep.mubr.msk.f32.mxu0 %vm344_vm0, %v276_v39  ;;  %921 = vmatprep.mubr.msk.f32.mxu1 %vm344_vm0, %v308_v40 }
  0x86   : > { %581 = vmatmul.mubr.f32.gmra.mrb[30].mxu0 %v275_v41  ;;  %661 = vmatmul.mubr.f32.gmra.mrb[30].mxu1 %v307_v42 }
 0x11d   : > { %v507_v45 = vpop.f32.mrb[0].mxu0  ;;  %v587_v46 = vpop.f32.mrb[0].mxu1 }
 0x11e   : > { %v508_v47 = vadd.f32 %v1488_v44, %v507_v45  ;;  %v509_v48 = vpop.f32.mrb[1].mxu0  ;;  %v1492_v49 = vadd.f32 %v1488_v44, %v587_v46  ;;  %v589_v50 = vpop.f32.mrb[1].mxu1 }
 0x120   : > { %666 = vst [vmem:[%s1494_s29] sm:$0xff] %v508_v47  ;;  %682 = vst [vmem:[%s1494_s29 + $0x80] sm:$0xff] %v1492_v49 }
 0x121   : > { %v512_v51 = vpop.f32.mrb[2].mxu0  ;;  %v592_v52 = vpop.f32.mrb[2].mxu1 }
 0x122   : > { %v513_v53 = vadd.f32 %v1488_v44, %v512_v51  ;;  %v514_v54 = vpop.f32.mrb[3].mxu0  ;;  %v1501_v55 = vadd.f32 %v1488_v44, %v592_v52  ;;  %v594_v56 = vpop.f32.mrb[3].mxu1 }
 0x124   : > { %667 = vst [vmem:[%s1494_s29 + $0x8] sm:$0xff] %v513_v53  ;;  %v698_v57 = vadd.f32 %v513_v53, %v508_v47  ;;  %683 = vst [vmem:[%s1494_s29 + $0x88] sm:$0xff] %v1501_v55 }
 0x125   : > { %v517_v58 = vpop.f32.mrb[4].mxu0  ;;  %v597_v59 = vpop.f32.mrb[4].mxu1 }
 0x126   : > { %v518_v60 = vadd.f32 %v1488_v44, %v517_v58  ;;  %v519_v61 = vpop.f32.mrb[5].mxu0  ;;  %v1508_v62 = vadd.f32 %v1488_v44, %v597_v59  ;;  %v599_v63 = vpop.f32.mrb[5].mxu1 }
 0x128   : > { %668 = vst [vmem:[%s1494_s29 + $0x10] sm:$0xff] %v518_v60  ;;  %v699_v0 = vadd.f32 %v698_v57, %v518_v60  ;;  %684 = vst [vmem:[%s1494_s29 + $0x90] sm:$0xff] %v1508_v62 }
 0x129   : > { %v522_v1 = vpop.f32.mrb[6].mxu0  ;;  %v602_v2 = vpop.f32.mrb[6].mxu1 }
 0x12a   : > { %v523_v3 = vadd.f32 %v1488_v44, %v522_v1  ;;  %v524_v4 = vpop.f32.mrb[7].mxu0  ;;  %v1515_v5 = vadd.f32 %v1488_v44, %v602_v2  ;;  %v604_v6 = vpop.f32.mrb[7].mxu1 }
 0x12c   : > { %669 = vst [vmem:[%s1494_s29 + $0x18] sm:$0xff] %v523_v3  ;;  %v700_v7 = vadd.f32 %v699_v0, %v523_v3  ;;  %685 = vst [vmem:[%s1494_s29 + $0x98] sm:$0xff] %v1515_v5 }
 0x12d   : > { %v527_v8 = vpop.f32.mrb[8].mxu0  ;;  %v607_v9 = vpop.f32.mrb[8].mxu1 }
 0x12e   : > { %v528_v10 = vadd.f32 %v1488_v44, %v527_v8  ;;  %v529_v11 = vpop.f32.mrb[9].mxu0  ;;  %v1522_v12 = vadd.f32 %v1488_v44, %v607_v9  ;;  %v609_v13 = vpop.f32.mrb[9].mxu1 }
 0x130   : > { %670 = vst [vmem:[%s1494_s29 + $0x20] sm:$0xff] %v528_v10  ;;  %v701_v14 = vadd.f32 %v700_v7, %v528_v10  ;;  %686 = vst [vmem:[%s1494_s29 + $0xa0] sm:$0xff] %v1522_v12 }
 0x131   : > { %v532_v15 = vpop.f32.mrb[10].mxu0  ;;  %v612_v16 = vpop.f32.mrb[10].mxu1 }
 0x132   : > { %v533_v17 = vadd.f32 %v1488_v44, %v532_v15  ;;  %v534_v18 = vpop.f32.mrb[11].mxu0  ;;  %v1529_v19 = vadd.f32 %v1488_v44, %v612_v16  ;;  %v614_v20 = vpop.f32.mrb[11].mxu1 }
 0x134   : > { %671 = vst [vmem:[%s1494_s29 + $0x28] sm:$0xff] %v533_v17  ;;  %v702_v21 = vadd.f32 %v701_v14, %v533_v17  ;;  %687 = vst [vmem:[%s1494_s29 + $0xa8] sm:$0xff] %v1529_v19 }
 0x135   : > { %v537_v22 = vpop.f32.mrb[12].mxu0  ;;  %v617_v23 = vpop.f32.mrb[12].mxu1 }
 0x136   : > { %v538_v24 = vadd.f32 %v1488_v44, %v537_v22  ;;  %v539_v25 = vpop.f32.mrb[13].mxu0  ;;  %v1536_v26 = vadd.f32 %v1488_v44, %v617_v23  ;;  %v619_v27 = vpop.f32.mrb[13].mxu1 }
 0x138   : > { %672 = vst [vmem:[%s1494_s29 + $0x30] sm:$0xff] %v538_v24  ;;  %v703_v28 = vadd.f32 %v702_v21, %v538_v24  ;;  %688 = vst [vmem:[%s1494_s29 + $0xb0] sm:$0xff] %v1536_v26 }
 0x139   : > { %v542_v29 = vpop.f32.mrb[14].mxu0  ;;  %v622_v30 = vpop.f32.mrb[14].mxu1 }
 0x13a   : > { %v543_v31 = vadd.f32 %v1488_v44, %v542_v29  ;;  %v544_v32 = vpop.f32.mrb[15].mxu0  ;;  %v1543_v33 = vadd.f32 %v1488_v44, %v622_v30  ;;  %v624_v34 = vpop.f32.mrb[15].mxu1 }
 0x13c   : > { %673 = vst [vmem:[%s1494_s29 + $0x38] sm:$0xff] %v543_v31  ;;  %v704_v35 = vadd.f32 %v703_v28, %v543_v31  ;;  %689 = vst [vmem:[%s1494_s29 + $0xb8] sm:$0xff] %v1543_v33 }
 0x13d   : > { %v547_v36 = vpop.f32.mrb[16].mxu0  ;;  %v627_v37 = vpop.f32.mrb[16].mxu1 }
 0x13e   : > { %v548_v38 = vadd.f32 %v1488_v44, %v547_v36  ;;  %v549_v39 = vpop.f32.mrb[17].mxu0  ;;  %v1550_v40 = vadd.f32 %v1488_v44, %v627_v37  ;;  %v629_v41 = vpop.f32.mrb[17].mxu1 }
 0x140   : > { %674 = vst [vmem:[%s1494_s29 + $0x40] sm:$0xff] %v548_v38  ;;  %v705_v42 = vadd.f32 %v704_v35, %v548_v38  ;;  %690 = vst [vmem:[%s1494_s29 + $0xc0] sm:$0xff] %v1550_v40 }
 0x141   : > { %v552_v43 = vpop.f32.mrb[18].mxu0  ;;  %v632_v45 = vpop.f32.mrb[18].mxu1 }
 0x142   : > { %v553_v46 = vadd.f32 %v1488_v44, %v552_v43  ;;  %v554_v47 = vpop.f32.mrb[19].mxu0  ;;  %v1557_v48 = vadd.f32 %v1488_v44, %v632_v45  ;;  %v634_v50 = vpop.f32.mrb[19].mxu1 }
 0x144   : > { %675 = vst [vmem:[%s1494_s29 + $0x48] sm:$0xff] %v553_v46  ;;  %v706_v51 = vadd.f32 %v705_v42, %v553_v46  ;;  %691 = vst [vmem:[%s1494_s29 + $0xc8] sm:$0xff] %v1557_v48 }
 0x145   : > { %v557_v52 = vpop.f32.mrb[20].mxu0  ;;  %v637_v53 = vpop.f32.mrb[20].mxu1 }
 0x146   : > { %v558_v54 = vadd.f32 %v1488_v44, %v557_v52  ;;  %v559_v56 = vpop.f32.mrb[21].mxu0  ;;  %v1564_v57 = vadd.f32 %v1488_v44, %v637_v53  ;;  %v639_v58 = vpop.f32.mrb[21].mxu1 }
 0x148   : > { %676 = vst [vmem:[%s1494_s29 + $0x50] sm:$0xff] %v558_v54  ;;  %v707_v59 = vadd.f32 %v706_v51, %v558_v54  ;;  %692 = vst [vmem:[%s1494_s29 + $0xd0] sm:$0xff] %v1564_v57 }
 0x149   : > { %v562_v60 = vpop.f32.mrb[22].mxu0  ;;  %v642_v61 = vpop.f32.mrb[22].mxu1 }
 0x14a   : > { %v563_v63 = vadd.f32 %v1488_v44, %v562_v60  ;;  %v564_v0 = vpop.f32.mrb[23].mxu0  ;;  %v1571_v1 = vadd.f32 %v1488_v44, %v642_v61  ;;  %v644_v2 = vpop.f32.mrb[23].mxu1 }
 0x14c   : > { %677 = vst [vmem:[%s1494_s29 + $0x58] sm:$0xff] %v563_v63  ;;  %v708_v3 = vadd.f32 %v707_v59, %v563_v63  ;;  %693 = vst [vmem:[%s1494_s29 + $0xd8] sm:$0xff] %v1571_v1 }
 0x14d   : > { %v567_v4 = vpop.f32.mrb[24].mxu0  ;;  %v647_v6 = vpop.f32.mrb[24].mxu1 }
 0x14e   : > { %v568_v7 = vadd.f32 %v1488_v44, %v567_v4  ;;  %v569_v8 = vpop.f32.mrb[25].mxu0  ;;  %v1578_v9 = vadd.f32 %v1488_v44, %v647_v6  ;;  %v649_v10 = vpop.f32.mrb[25].mxu1 }
 0x150   : > { %678 = vst [vmem:[%s1494_s29 + $0x60] sm:$0xff] %v568_v7  ;;  %v709_v11 = vadd.f32 %v708_v3, %v568_v7  ;;  %694 = vst [vmem:[%s1494_s29 + $0xe0] sm:$0xff] %v1578_v9 }
 0x151   : > { %v572_v13 = vpop.f32.mrb[26].mxu0  ;;  %v652_v14 = vpop.f32.mrb[26].mxu1 }
 0x152   : > { %v573_v15 = vadd.f32 %v1488_v44, %v572_v13  ;;  %v574_v16 = vpop.f32.mrb[27].mxu0  ;;  %v1585_v17 = vadd.f32 %v1488_v44, %v652_v14  ;;  %v654_v18 = vpop.f32.mrb[27].mxu1 }
 0x154   : > { %679 = vst [vmem:[%s1494_s29 + $0x68] sm:$0xff] %v573_v15  ;;  %v710_v20 = vadd.f32 %v709_v11, %v573_v15  ;;  %695 = vst [vmem:[%s1494_s29 + $0xe8] sm:$0xff] %v1585_v17 }
 0x155   : > { %v577_v21 = vpop.f32.mrb[28].mxu0  ;;  %v657_v22 = vpop.f32.mrb[28].mxu1 }
 0x156   : > { %v578_v23 = vadd.f32 %v1488_v44, %v577_v21  ;;  %v579_v24 = vpop.f32.mrb[29].mxu0  ;;  %v658_v25 = vadd.f32 %v1488_v44, %v657_v22  ;;  %v659_v27 = vpop.f32.mrb[29].mxu1 }
 0x158   : > { %680 = vst [vmem:[%s1494_s29 + $0x70] sm:$0xff] %v578_v23  ;;  %v711_v28 = vadd.f32 %v710_v20, %v578_v23  ;;  %696 = vst [vmem:[%s1494_s29 + $0xf0] sm:$0xff] %v658_v25 }
 0x159   : > { %v582_v29 = vpop.f32.mrb[30].mxu0  ;;  %v662_v30 = vpop.f32.mrb[30].mxu1 }
 0x15a   : > { %v583_v31 = vadd.f32 %v1488_v44, %v582_v29  ;;  %v584_v32 = vpop.f32.mrb[31].mxu0  ;;  %v663_v34 = vadd.f32 %v1488_v44, %v662_v30  ;;  %v664_v35 = vpop.f32.mrb[31].mxu1 }
 0x15c   : > { %681 = vst [vmem:[%s1494_s29 + $0x78] sm:$0xff] %v583_v31  ;;  %v712_v36 = vadd.f32 %v711_v28, %v583_v31  ;;  %697 = vst [vmem:[%s1494_s29 + $0xf8] sm:$0xff] %v663_v34 }
 0x15d   : > { %1077 = shalt.err (!%p1074_p5)
}
 0x15e   : > { %s1078_s5 = scalar_lea.hbm %s1599_s12, 4096  ;;  %s1082_s29 = scalar_lea.hbm %s1703_s3, 8192 }
 0x15f   : > { %p1079_p6 = scmp.ne.s32.totalorder %s1599_s12, %s1078_s5  ;;  %p1083_p10 = scmp.lt.u32.totalorder %s1599_s12, %s1703_s3 }
 0x160   : > { %p1084_p11 = scmp.lt.u32.totalorder %s1082_s29, %s1078_s5  ;;  %p1086_p13 = scmp.lt.u32.totalorder %s1078_s5, %s1599_s12 }
 0x161   : > { %p1080_p7 = pnand %p1079_p6, %p1247_p4 }
 0x162   : > { %p1085_p12 = por %p1084_p11, %p1083_p10 }
 0x163   : > { %p1081_p9 = pneg %p1080_p7 }
 0x164   : > { %p1087_p0 = por %p1086_p13, %p1085_p12 }
 0x166   : > { %p1088_p1 = pnand %p1087_p0, %p1081_p9 }
 0x168   : > { %1091 = shalt.err (!%p1088_p1)
}
 0x169   : > { %s1179_s11 = smov 128   ;;  %s1180_s14 = smov 8   ;;  %v713_v44 = vadd.f32 %v712_v36, %v1492_v49  ;;  %v735_v52 = vld [vmem:[%s1481_s30] sm:$0x1] }
 0x16a   : > { %1000 = dma.vmem_to_hbm [thread:$0]  (%p1247_p4), %s1601_s9, 4096, %s1599_s12, %s739_s13, %s1179_s11, %s1179_s11, %s1180_s14  }
 0x16b   : > { %v714_v37 = vadd.f32 %v713_v44, %v1501_v55  ;;  %s925_s9 = sshll.u32 %s1166_s18, 4  ;;  %s774_s12 = sshll.u32 %s1481_s30, 4  ;;  %s1653_s12 = int_to_ptr.vmem [resolvable:$true] %s774_s12 }
 0x16c   : > { %s1651_s22 = scalar_lea.hbm %s1704_s4, %s925_s9  ;;  %s744_s24 = scalar_lea.sflag [#allocation5], %s1478_s26 }
 0x16d   : > { %v715_v38 = vadd.f32 %v714_v37, %v1508_v62  ;;  %s1092_s5 = scalar_lea.vmem %s1653_s12, 16  ;;  %s1181_s18 = smov [#allocation4]  }
 0x16e   : > { %p1093_p2 = scmp.ne.s32.totalorder %s1653_s12, %s1092_s5  ;;  %s1096_s6 = sshll.u32 %s1181_s18, 4  ;;  %s1097_s6 = int_to_ptr.vmem [resolvable:$false] %s1096_s6 }
 0x16f   : > { %v716_v39 = vadd.f32 %v715_v38, %v1515_v5  ;;  %s1098_s7 = scalar_lea.vmem %s1097_s6, 32  ;;  %p1099_p6 = scmp.lt.s32.totalorder %s1653_s12, %s1097_s6 }
 0x170   : > { %p1094_p3 = pnand %p1093_p2, %p1247_p4  ;;  %p1100_p7 = scmp.lt.s32.totalorder %s1098_s7, %s1092_s5 }
 0x171   : > { %v717_v41 = vadd.f32 %v716_v39, %v1522_v12 }
 0x172   : > { %p1095_p5 = pneg %p1094_p3  ;;  %p1101_p9 = por %p1100_p7, %p1099_p6 }
 0x173   : > { %v718_v42 = vadd.f32 %v717_v41, %v1529_v19 }
 0x174   : > { %p1102_p10 = pnand %p1101_p9, %p1095_p5 }
 0x175   : > { %v719_v43 = vadd.f32 %v718_v42, %v1536_v26 }
 0x177   : > { %v720_v45 = vadd.f32 %v719_v43, %v1543_v33 }
 0x179   : > { %v721_v46 = vadd.f32 %v720_v45, %v1550_v40 }
 0x17b   : > { %v722_v49 = vadd.f32 %v721_v46, %v1557_v48 }
 0x17d   : > { %v723_v55 = vadd.f32 %v722_v49, %v1564_v57 }
 0x17f   : > { %v724_v62 = vadd.f32 %v723_v55, %v1571_v1 }
 0x181   : > { %v725_v5 = vadd.f32 %v724_v62, %v1578_v9 }
 0x183   : > { %v726_v12 = vadd.f32 %v725_v5, %v1585_v17 }
 0x185   : > { %v727_v19 = vadd.f32 %v726_v12, %v658_v25 }
 0x187   : > { %v728_v26 = vadd.f32 %v727_v19, %v663_v34 }
 0x189   : > { %v729_v47 = vrot.slane %v728_v26, 4 }
 0x18b   : > { %v730_v33 = vadd.f32 %v729_v47, %v728_v26 }
 0x18d   : > { %v731_v50 = vrot.slane %v730_v33, 2 }
 0x18f   : > { %v732_v51 = vadd.f32 %v731_v50, %v730_v33 }
 0x191   : > { %v733_v40 = vrot.slane %v732_v51, 1 }
 0x193   : > { %v734_v48 = vadd.f32 %v733_v40, %v732_v51 }
 0x195   : > { %v736_v53 = vadd.f32 %v735_v52, %v734_v48 }
 0x197   : > { %737 = vst [vmem:[%s1481_s30] sm:$0x1] %v736_v53 }
 0x198   : > { %1105 = shalt.err (!%p1102_p10)
}
 0x199   : > { %s1106_s26 = scalar_lea.hbm %s1651_s22, 16  ;;  %s1110_s8 = scalar_lea.hbm %s1704_s4, 32 }
 0x19a   : > { %p1107_p11 = scmp.ne.s32.totalorder %s1651_s22, %s1106_s26  ;;  %p1111_p0 = scmp.lt.u32.totalorder %s1651_s22, %s1704_s4 }
 0x19b   : > { %p1112_p1 = scmp.lt.u32.totalorder %s1110_s8, %s1106_s26  ;;  %p1114_p3 = scmp.lt.u32.totalorder %s1106_s26, %s1651_s22 }
 0x19c   : > { %p1108_p12 = pnand %p1107_p11, %p1247_p4 }
 0x19d   : > { %p1113_p2 = por %p1112_p1, %p1111_p0 }
 0x19e   : > { %p1109_p13 = pneg %p1108_p12 }
 0x19f   : > { %p1115_p5 = por %p1114_p3, %p1113_p2 }
 0x1a1   : > { %p1116_p6 = pnand %p1115_p5, %p1109_p13 }
 0x1a3   : > { %1119 = shalt.err (!%p1116_p6)
}
 0x1a4   : > { %1001 = dma.vmem_to_hbm [thread:$0]  (%p1247_p4), %s1653_s12, 16, %s1651_s22, %s744_s24  }
 0x1a5 PF: > { %p1011_p7 = scmp.ge.s32.totalorder %s1174_s20, 2  ;;  %s786_s14 = sand.u32 1, %s1154_s15  }
 0x1a6   : > { %s787_s9 = scalar_lea.sflag [#allocation3], %s786_s14 }
 0x1a7   : > { %p1005_p9 = pnand %p1011_p7, %p1254_p8 }
 0x1a9   : > { %1145 = dma.done.wait (!%p1005_p9), %s787_s9, 4096  }
 0x1aa   : > { %1147 = vsyncadd (!%p1005_p9), %s787_s9, 4294963200  ;;  %s796_s13 = scalar_lea.sflag [#allocation5], %s786_s14 }
 0x1ab   : > { %1149 = dma.done.wait (!%p1005_p9), %s796_s13, 16  }
 0x1ac   : > { %1151 = vsyncadd (!%p1005_p9), %s796_s13, 4294967280  ;;  %s21_s20 = sadd.s32 1, %s1174_s20   ;;  %s1707_s15 = smov %s1158_s16 }
 0x1ad   : > { %p18_p10 = scmp.ge.s32.totalorder %s21_s20, 4   ;;  %s1708_s16 = smov %s1162_s17 }
 0x1ae   : > { %s1709_s17 = smov %s1260_s28  ;;  %s1710_s18 = smov %s1170_s19 }
 0x1af   : > { %s1711_s19 = smov %s1713_s23  ;;  %20 = sbr.rel (!%p18_p10) target bundleno = 6 (0x6), region = 88 }
 0x1b6   :  { %800 = vsyncpa [#allocation3], 1 }
 0x1b7   :  { %802 = vsyncpa [#allocation3 + $0x1], 1 }
 0x1b8   :  { %803 = vsyncpa [#allocation5], 1 }
 0x1b9   :  { %805 = vsyncpa [#allocation5 + $0x1], 1 }

</bundles_post_ra>
